<compile_context>
chip_gen: v5e
topology: v5e:2x2
jax: 0.10.0
libtpu: 0.0.40
codegen_flags: <defaults>
</compile_context>

<pallas_src>
import jax
import jax.numpy as jnp
from jax.experimental import pallas as pl
from jax.experimental.pallas import tpu as pltpu


# ----------------------------------------------------------------------------
# Pallas kernel: fused (masked-mean over S tiles + folded projections/linear_out)
# ----------------------------------------------------------------------------
def bert_head_kernel(mask_ref,    # (Bt, St)      bf16  normalized aspect-mask tile
                     tagger_ref,  # (Bt, St, H)   bf16  last_hidden_state tile
                     pooled_ref,  # (Bt, H)       bf16  pooler_output block
                     wc_ref,      # (H, Pp)       bf16  folded projections->linear_out weight
                     wb_ref,      # (H, Pp)       bf16  linear_out weight, pooled part
                     bc_ref,      # (1, Pp)       f32   folded bias
                     out_ref,     # (Bt, Pp)      f32   lane-dense logits slab
                     acc_ref):    # (Bt, H)       f32   VMEM scratch: masked partial sum
    k = pl.program_id(1)

    @pl.when(k == 0)
    def _init():
        acc_ref[...] = jnp.zeros_like(acc_ref)

    # Aspect-masked partial sum over this sequence tile.  VPU multiply + XLU
    # reduce: the kernel is HBM-bound on the tagger stream, so these slots are
    # free and the MXU stays reserved for the weight matmuls below.
    m = mask_ref[...].astype(jnp.float32)                  # (Bt, St)
    t = tagger_ref[...].astype(jnp.float32)                # (Bt, St, H)
    acc_ref[...] += jnp.sum(m[..., None] * t, axis=1)      # (Bt, H) f32

    @pl.when(k == pl.num_programs(1) - 1)
    def _finalize():
        s = acc_ref[...].astype(wc_ref.dtype)              # (Bt, H) bf16
        out_ref[...] = (
            jnp.dot(s, wc_ref[...], preferred_element_type=jnp.float32)
            + jnp.dot(pooled_ref[...], wb_ref[...],
                      preferred_element_type=jnp.float32)
            + bc_ref[...])                                  # (Bt, Pp) f32


def bert_head_pallas(tagger, aspect_mask, pooled, w_proj, b_proj, w_out, b_out,
                     block_b=None, block_s=None):
    """tagger: [B,S,H] f32, aspect_mask: [B,S] f32, pooled: [B,H] f32.
    w_proj: [EMB,H], b_proj: [EMB], w_out: [P, EMB+H], b_out: [P] (PyTorch layout)."""
    B, S, H = tagger.shape
    EMB = w_proj.shape[0]
    P = b_out.shape[0]
    P_pad = 128 * pl.cdiv(P, 128)                      # lane-dense output slab

    # --- tile sizes ---------------------------------------------------------
    if block_b is None:                                # fill the MXU rows when the
        if B >= 128 and B % 128 == 0:                  # batch allows it (v6e/v7x
            block_b = 128                              # 256-wide, v5e 128-wide)
        elif B >= 64 and B % 64 == 0:
            block_b = 64
        else:
            block_b = 8
    if block_s is None:
        block_s = min(128, 8 * pl.cdiv(S, 8))          # sublane-aligned seq tile
    B_pad = block_b * pl.cdiv(B, block_b)
    S_pad = block_s * pl.cdiv(S, block_s)
    nb = B_pad // block_b
    ns = S_pad // block_s

    # --- wrapper-side folding (exact linear algebra, done in f32) -----------
    # fold 1/count into the mask rows (zero-count rows -> NaN, same as the
    # PyTorch reference; precondition: real rows have >= 1 aspect token)
    count = aspect_mask.sum(axis=1, keepdims=True)                   # (B, 1)
    mask_norm = (aspect_mask / count).astype(jnp.float32)            # (B, S)

    # fold the linear chain (projections followed by linear_out)
    wp_t = w_proj.T.astype(jnp.float32)                              # (H, EMB)
    wa_t = w_out[:, :EMB].T.astype(jnp.float32)                      # (EMB, P)
    wb_t = w_out[:, EMB:].T.astype(jnp.float32)                      # (H, P)
    w_comb = wp_t @ wa_t                                             # (H, P)
    b_comb = b_proj.reshape(1, EMB) @ wa_t + b_out.reshape(1, P)     # (1, P)

    # --- pad to the tile grid / lane-dense output, cast streams to bf16 -----
    mask_p = jnp.pad(mask_norm,
                     ((0, B_pad - B), (0, S_pad - S))).astype(jnp.bfloat16)
    tagger_p = jnp.pad(tagger.astype(jnp.float32),
                       ((0, B_pad - B), (0, S_pad - S), (0, 0))).astype(jnp.bfloat16)
    pooled_p = jnp.pad(pooled.astype(jnp.float32),
                       ((0, B_pad - B), (0, 0))).astype(jnp.bfloat16)
    lane_pad = P_pad - P
    w_comb_p = jnp.pad(w_comb, ((0, 0), (0, lane_pad))).astype(jnp.bfloat16)
    wb_t_p = jnp.pad(wb_t, ((0, 0), (0, lane_pad))).astype(jnp.bfloat16)
    b_comb_p = jnp.pad(b_comb, ((0, 0), (0, lane_pad))).astype(jnp.float32)

    # --- explicit VMEM budget (double-buffered streams + scratch + output) --
    vmem_bytes = (
        2 * block_b * block_s * 2                  # mask tiles (bf16)
        + 2 * block_b * block_s * H * 2            # tagger tiles (bf16, dominant)
        + 2 * block_b * H * 2                      # pooled tiles (bf16)
        + 2 * 2 * H * P_pad * 2                    # both weight slabs (bf16)
        + 2 * P_pad * 4                            # folded bias (f32)
        + 2 * block_b * P_pad * 4                  # output tile (f32)
        + block_b * H * 4)                         # accumulator scratch (f32)
    vmem_limit = int(min(2 * vmem_bytes + (2 << 20), 64 << 20))

    cost = pl.CostEstimate(
        flops=2 * B_pad * S_pad * H + 4 * B_pad * H * P_pad,
        transcendentals=0,
        bytes_accessed=((mask_p.size + tagger_p.size + pooled_p.size
                         + w_comb_p.size + wb_t_p.size) * 2
                        + b_comb_p.size * 4 + B_pad * P_pad * 4))

    # NOTE: on v7x the constant-index weight/bias inputs could additionally use
    # pipeline_mode=pl.Buffered(1) to skip double-buffering invariant operands.
    out = pl.pallas_call(
        bert_head_kernel,
        out_shape=jax.ShapeDtypeStruct((B_pad, P_pad), jnp.float32),
        grid_spec=pltpu.PrefetchScalarGridSpec(
            num_scalar_prefetch=0,
            grid=(nb, ns),                         # batch (parallel), seq (reduction)
            in_specs=[
                pl.BlockSpec((block_b, block_s), lambda b, k: (b, k)),
                pl.BlockSpec((block_b, block_s, H), lambda b, k: (b, k, 0)),
                pl.BlockSpec((block_b, H), lambda b, k: (b, 0)),
                pl.BlockSpec((H, P_pad), lambda b, k: (0, 0)),
                pl.BlockSpec((H, P_pad), lambda b, k: (0, 0)),
                pl.BlockSpec((1, P_pad), lambda b, k: (0, 0)),
            ],
            out_specs=pl.BlockSpec((block_b, P_pad), lambda b, k: (b, 0)),
            scratch_shapes=[pltpu.VMEM((block_b, H), jnp.float32)],
        ),
        compiler_params=pltpu.CompilerParams(
            dimension_semantics=("parallel", "arbitrary"),
            vmem_limit_bytes=vmem_limit),
        cost_estimate=cost,
    )(mask_p, tagger_p, pooled_p, w_comb_p, wb_t_p, b_comb_p)
    return out[:B, :P]


# ----------------------------------------------------------------------------
# Deterministic stand-in for the pretrained BERT submodule (plain-JAX glue)
# ----------------------------------------------------------------------------
# TODO(synk): the pretrained HuggingFace BERT encoder (`self.bert`) cannot be
# reproduced here; this is a deterministic embedding + layernorm + tanh-pooler
# stand-in producing tensors with the same shapes/roles.
def tiny_bert(params, ids, seg_ids, attn_mask):
    S = ids.shape[1]
    h = (params["word_emb"][ids]
         + params["seg_emb"][seg_ids]
         + params["pos_emb"][None, :S, :])
    h = h * attn_mask[..., None].astype(h.dtype)
    mu = h.mean(axis=-1, keepdims=True)
    var = ((h - mu) ** 2).mean(axis=-1, keepdims=True)
    last_hidden_state = (h - mu) / jnp.sqrt(var + 1e-12)
    pooled = jnp.tanh(last_hidden_state[:, 0] @ params["w_pool"] + params["b_pool"])
    return last_hidden_state, pooled


def bert_module_forward(params, inputs):
    (text_bert_indices, bert_segments_ids, attention_mask,
     asp_start, asp_end, adj_dep, src_mask, aspect_mask) = inputs
    del asp_start, asp_end, adj_dep, src_mask  # unused in the reference forward

    tagger_input, pooled_output = tiny_bert(params, text_bert_indices,
                                            bert_segments_ids, attention_mask)
    # pooled_drop / bert_drop are nn.Dropout -> identity in eval mode.
    return bert_head_pallas(tagger_input, aspect_mask.astype(jnp.float32),
                            pooled_output,
                            params["w_proj"], params["b_proj"],
                            params["w_out"], params["b_out"])


# pure-JAX f32 reference for the head (correctness check)
def bert_head_ref(tagger, aspect_mask, pooled, w_proj, b_proj, w_out, b_out):
    h = jnp.einsum("bsh,eh->bse", tagger, w_proj) + b_proj[None, None, :]
    num = aspect_mask.sum(axis=1, keepdims=True)
    out = (h * aspect_mask[..., None]).sum(axis=1) / num
    cat = jnp.concatenate([out, pooled], axis=-1)
    return cat @ w_out.T + b_out[None, :]


if __name__ == "__main__":
    # small shapes consistent with the module's forward
    B, S = 2, 8            # batch, sequence length
    V, NSEG = 50, 2        # vocab / segment sizes (stand-in)
    HID = 32               # opt.hidden_dim == bert hidden size
    EMB = 16               # self.emb_dim
    P = 3                  # opt.polarities_dim

    key = jax.random.PRNGKey(0)
    ks = jax.random.split(key, 12)

    params = {
        "word_emb": 0.02 * jax.random.normal(ks[0], (V, HID), jnp.float32),
        "seg_emb":  0.02 * jax.random.normal(ks[1], (NSEG, HID), jnp.float32),
        "pos_emb":  0.02 * jax.random.normal(ks[2], (S, HID), jnp.float32),
        "w_pool":   0.05 * jax.random.normal(ks[3], (HID, HID), jnp.float32),
        "b_pool":   0.01 * jax.random.normal(ks[4], (HID,), jnp.float32),
        "w_proj":   0.05 * jax.random.normal(ks[5], (EMB, HID), jnp.float32),
        "b_proj":   0.01 * jax.random.normal(ks[6], (EMB,), jnp.float32),
        "w_out":    0.05 * jax.random.normal(ks[7], (P, EMB + HID), jnp.float32),
        "b_out":    0.01 * jax.random.normal(ks[8], (P,), jnp.float32),
    }

    text_bert_indices = jax.random.randint(ks[9], (B, S), 1, V)
    bert_segments_ids = jnp.concatenate(
        [jnp.zeros((B, S // 2), jnp.int32), jnp.ones((B, S - S // 2), jnp.int32)], axis=1)
    attention_mask = jnp.ones((B, S), jnp.float32)
    asp_start = jnp.array([2, 3], jnp.int32)
    asp_end = jnp.array([4, 5], jnp.int32)
    adj_dep = jnp.zeros((B, S, S), jnp.float32)
    src_mask = jnp.ones((B, S), jnp.float32)
    aspect_mask = jnp.zeros((B, S), jnp.float32).at[0, 2:4].set(1.0).at[1, 3:5].set(1.0)

    inputs = (text_bert_indices, bert_segments_ids, attention_mask,
              asp_start, asp_end, adj_dep, src_mask, aspect_mask)

    logits = bert_module_forward(params, inputs)
    logits = jax.block_until_ready(logits)

    # verify the Pallas head against a pure-JAX f32 reference (streamed operands
    # are bf16 in the kernel, so the tolerance is relaxed accordingly)
    tagger, pooled = tiny_bert(params, text_bert_indices, bert_segments_ids, attention_mask)
    ref = bert_head_ref(tagger, aspect_mask, pooled,
                        params["w_proj"], params["b_proj"],
                        params["w_out"], params["b_out"])
    assert logits.shape == (B, P)
    assert bool(jnp.all(jnp.isfinite(logits)))
    assert jnp.allclose(logits, ref, atol=2e-2, rtol=2e-2), (logits, ref)

    print("KERNEL_OK")
</pallas_src>

<mosaic_0001>
module attributes {stable_mosaic.version = 11 : i64} {
  func.func @bert_head_kernel(%arg0: i32, %arg1: i32, %arg2: memref<8x8xbf16, #tpu.memory_space<vmem>>, %arg3: memref<8x8x32xbf16, #tpu.memory_space<vmem>>, %arg4: memref<8x32xbf16, #tpu.memory_space<vmem>>, %arg5: memref<32x128xbf16, #tpu.memory_space<vmem>>, %arg6: memref<32x128xbf16, #tpu.memory_space<vmem>>, %arg7: memref<1x128xf32, #tpu.memory_space<vmem>>, %arg8: memref<8x128xf32, #tpu.memory_space<vmem>>, %arg9: memref<8x32xf32, #tpu.memory_space<vmem>>) attributes {dimension_semantics = [#tpu.dimension_semantics<parallel>, #tpu.dimension_semantics<arbitrary>], iteration_bounds = array<i64: 1, 1>, scalar_prefetch = 0 : i64, scratch_operands = 1 : i64, tpu.core_type = #tpu.core_type<tc>, window_params = [{transform_indices = @transform_0, window_bounds = array<i64: 8, 8>}, {transform_indices = @transform_1, window_bounds = array<i64: 8, 8, 32>}, {transform_indices = @transform_2, window_bounds = array<i64: 8, 32>}, {pipeline_mode = #tpu.pipeline_mode<synchronous>, transform_indices = @transform_3, window_bounds = array<i64: 32, 128>}, {pipeline_mode = #tpu.pipeline_mode<synchronous>, transform_indices = @transform_4, window_bounds = array<i64: 32, 128>}, {pipeline_mode = #tpu.pipeline_mode<synchronous>, transform_indices = @transform_5, window_bounds = array<i64: 1, 128>}, {transform_indices = @transform_6, window_bounds = array<i64: 8, 128>}]} {
    %c0_i32 = arith.constant 0 : i32
    %0 = arith.cmpi eq, %arg1, %c0_i32 : i32
    %1 = arith.extui %0 : i1 to i32
    %c0_i32_0 = arith.constant 0 : i32
    %2 = arith.cmpi ne, %1, %c0_i32_0 : i32
    scf.if %2 {
      %cst_11 = arith.constant 0.000000e+00 : f32
      %17 = vector.broadcast %cst_11 : f32 to vector<8x32xf32>
      %c0_12 = arith.constant 0 : index
      %c0_13 = arith.constant 0 : index
      %18 = vector.load %arg9[%c0_12, %c0_13] : memref<8x32xf32, #tpu.memory_space<vmem>>, vector<8x32xf32>
      tpu.vector_store %arg9[%c0_12, %c0_13], %17 {strides = array<i32>} : memref<8x32xf32, #tpu.memory_space<vmem>>, vector<8x32xf32>,
    } else {
    }
    %c0 = arith.constant 0 : index
    %c0_1 = arith.constant 0 : index
    %3 = vector.load %arg2[%c0, %c0_1] : memref<8x8xbf16, #tpu.memory_space<vmem>>, vector<8x8xbf16>
    %4 = arith.extf %3 : vector<8x8xbf16> to vector<8x8xf32>
    %c0_2 = arith.constant 0 : index
    %c0_3 = arith.constant 0 : index
    %c0_4 = arith.constant 0 : index
    %5 = vector.load %arg3[%c0_2, %c0_3, %c0_4] : memref<8x8x32xbf16, #tpu.memory_space<vmem>>, vector<8x8x32xbf16>
    %6 = arith.extf %5 : vector<8x8x32xbf16> to vector<8x8x32xf32>
    %c0_5 = arith.constant 0 : index
    %c0_6 = arith.constant 0 : index
    %7 = vector.load %arg9[%c0_5, %c0_6] : memref<8x32xf32, #tpu.memory_space<vmem>>, vector<8x32xf32>
    %8 = vector.shape_cast %4 : vector<8x8xf32> to vector<8x8x1xf32>
    %9 = vector.broadcast %8 : vector<8x8x1xf32> to vector<8x8x32xf32>
    %10 = arith.mulf %9, %6 : vector<8x8x32xf32>
    %cst = arith.constant dense<0.000000e+00> : vector<8x32xf32>
    %11 = vector.multi_reduction <add>, %10, %cst [1] : vector<8x8x32xf32> to vector<8x32xf32>
    %12 = arith.addf %7, %11 : vector<8x32xf32>
    %c0_7 = arith.constant 0 : index
    %c0_8 = arith.constant 0 : index
    %13 = vector.load %arg9[%c0_7, %c0_8] : memref<8x32xf32, #tpu.memory_space<vmem>>, vector<8x32xf32>
    tpu.vector_store %arg9[%c0_7, %c0_8], %12 {strides = array<i32>} : memref<8x32xf32, #tpu.memory_space<vmem>>, vector<8x32xf32>,
    %c0_i32_9 = arith.constant 0 : i32
    %14 = arith.cmpi eq, %arg1, %c0_i32_9 : i32
    %15 = arith.extui %14 : i1 to i32
    %c0_i32_10 = arith.constant 0 : i32
    %16 = arith.cmpi ne, %15, %c0_i32_10 : i32
    scf.if %16 {
      %c0_11 = arith.constant 0 : index
      %c0_12 = arith.constant 0 : index
      %17 = vector.load %arg9[%c0_11, %c0_12] : memref<8x32xf32, #tpu.memory_space<vmem>>, vector<8x32xf32>
      %18 = arith.truncf %17 : vector<8x32xf32> to vector<8x32xbf16>
      %c0_13 = arith.constant 0 : index
      %c0_14 = arith.constant 0 : index
      %19 = vector.load %arg5[%c0_13, %c0_14] : memref<32x128xbf16, #tpu.memory_space<vmem>>, vector<32x128xbf16>
      %cst_15 = arith.constant dense<0.000000e+00> : vector<8x128xf32>
      %20 = tpu.matmul %18, %19, %cst_15 {dimension_numbers = #tpu.dot_dimension_numbers<[1], [0], [0], [1], [0, 0, 1, 1], [], []>} : vector<8x32xbf16>, vector<32x128xbf16>, vector<8x128xf32> -> vector<8x128xf32>
      %c0_16 = arith.constant 0 : index
      %c0_17 = arith.constant 0 : index
      %21 = vector.load %arg4[%c0_16, %c0_17] : memref<8x32xbf16, #tpu.memory_space<vmem>>, vector<8x32xbf16>
      %c0_18 = arith.constant 0 : index
      %c0_19 = arith.constant 0 : index
      %22 = vector.load %arg6[%c0_18, %c0_19] : memref<32x128xbf16, #tpu.memory_space<vmem>>, vector<32x128xbf16>
      %cst_20 = arith.constant dense<0.000000e+00> : vector<8x128xf32>
      %23 = tpu.matmul %21, %22, %cst_20 {dimension_numbers = #tpu.dot_dimension_numbers<[1], [0], [0], [1], [0, 0, 1, 1], [], []>} : vector<8x32xbf16>, vector<32x128xbf16>, vector<8x128xf32> -> vector<8x128xf32>
      %24 = arith.addf %20, %23 : vector<8x128xf32>
      %c0_21 = arith.constant 0 : index
      %c0_22 = arith.constant 0 : index
      %25 = vector.load %arg7[%c0_21, %c0_22] : memref<1x128xf32, #tpu.memory_space<vmem>>, vector<1x128xf32>
      %26 = vector.broadcast %25 : vector<1x128xf32> to vector<8x128xf32>
      %27 = arith.addf %24, %26 : vector<8x128xf32>
      %c0_23 = arith.constant 0 : index
      %c0_24 = arith.constant 0 : index
      %28 = vector.load %arg8[%c0_23, %c0_24] : memref<8x128xf32, #tpu.memory_space<vmem>>, vector<8x128xf32>
      tpu.vector_store %arg8[%c0_23, %c0_24], %27 {strides = array<i32>} : memref<8x128xf32, #tpu.memory_space<vmem>>, vector<8x128xf32>,
    } else {
    }
    return
  }
  func.func @transform_0(%arg0: i32, %arg1: i32) -> (i32, i32) {
    %c0_i32 = arith.constant 0 : i32
    return %arg0, %arg1 : i32, i32
  }
  func.func @transform_1(%arg0: i32, %arg1: i32) -> (i32, i32, i32) {
    %c0_i32 = arith.constant 0 : i32
    %c0_i32_0 = arith.constant 0 : i32
    return %arg0, %arg1, %c0_i32 : i32, i32, i32
  }
  func.func @transform_2(%arg0: i32, %arg1: i32) -> (i32, i32) {
    %c0_i32 = arith.constant 0 : i32
    %c0_i32_0 = arith.constant 0 : i32
    return %arg0, %c0_i32 : i32, i32
  }
  func.func @transform_3(%arg0: i32, %arg1: i32) -> (i32, i32) {
    %c0_i32 = arith.constant 0 : i32
    %c0_i32_0 = arith.constant 0 : i32
    %c0_i32_1 = arith.constant 0 : i32
    return %c0_i32, %c0_i32_0 : i32, i32
  }
  func.func @transform_4(%arg0: i32, %arg1: i32) -> (i32, i32) {
    %c0_i32 = arith.constant 0 : i32
    %c0_i32_0 = arith.constant 0 : i32
    %c0_i32_1 = arith.constant 0 : i32
    return %c0_i32, %c0_i32_0 : i32, i32
  }
  func.func @transform_5(%arg0: i32, %arg1: i32) -> (i32, i32) {
    %c0_i32 = arith.constant 0 : i32
    %c0_i32_0 = arith.constant 0 : i32
    %c0_i32_1 = arith.constant 0 : i32
    return %c0_i32, %c0_i32_0 : i32, i32
  }
  func.func @transform_6(%arg0: i32, %arg1: i32) -> (i32, i32) {
    %c0_i32 = arith.constant 0 : i32
    %c0_i32_0 = arith.constant 0 : i32
    return %arg0, %c0_i32 : i32, i32
  }
}

</mosaic_0001>

<bundles_post_ra>
// kernel: tpu_custom_call.1
= control target key start
LH: loop header
LB: loop body
LE: loop exit
PB: predicated region body
PF: predicated region fallthrough
CT: control target
= control target key end

     0   :  { %11 = vsyncpa [#allocation4], 0  ;;  %s667_s0 = inlined_call_operand.hbm [shape: bf16[8,8], index: 0, kind: input, shape index: {}]   ;;  %s668_s1 = inlined_call_operand.hbm [shape: bf16[8,8,32], index: 1, kind: input, shape index: {}]   ;;  %s669_s2 = inlined_call_operand.hbm [shape: bf16[8,32], index: 2, kind: input, shape index: {}]   ;;  %s670_s3 = inlined_call_operand.hbm [shape: bf16[32,128], index: 3, kind: input, shape index: {}]   ;;  %s671_s4 = inlined_call_operand.hbm [shape: bf16[32,128], index: 4, kind: input, shape index: {}]   ;;  %s672_s5 = inlined_call_operand.vmem [shape: f32[1,128], index: 5, kind: input, shape index: {}]   ;;  %s673_s6 = inlined_call_operand.hbm [shape: f32[8,128], index: 6, kind: output, shape index: {}]  }
   0x1   :  { %12 = vsyncpa [#allocation7], 0 }
   0x2   :  { %13 = vsyncpa [#allocation10], 0  ;;  %s30_s23 = sshll.u32 %s668_s1, 4  ;;  %s31_s23 = int_to_ptr.hbm [resolvable:$true] %s30_s23 }
   0x3   :  { %14 = vsyncpa [#allocation5], 0  ;;  %s590_s24 = smov [#allocation6]   ;;  %s54_s28 = sshll.u32 %s670_s3, 4  ;;  %s55_s28 = int_to_ptr.hbm [resolvable:$true] %s54_s28 }
   0x4   :  { %s32_s25 = sshll.u32 %s590_s24, 4  ;;  %s591_s29 = smov 64   ;;  %s33_s25 = int_to_ptr.vmem [resolvable:$true] %s32_s25 }
   0x5   :  { %s592_s30 = smov 4   ;;  %s593_s7 = smov [#allocation9]  }
   0x6   :  { %38 = dma.hbm_to_vmem [thread:$0]  %s31_s23, 512, %s33_s25, [#allocation7], %s591_s29, %s591_s29, %s592_s30  }
   0x7   :  { %s56_s8 = sshll.u32 %s593_s7, 4  ;;  %s20_s11 = sshll.u32 %s667_s0, 4  ;;  %s57_s8 = int_to_ptr.vmem [resolvable:$true] %s56_s8  ;;  %s21_s11 = int_to_ptr.hbm [resolvable:$true] %s20_s11 }
   0x8   :  { %62 = dma.hbm_to_vmem [thread:$0]  %s55_s28, 256, %s57_s8, [#allocation10], %s591_s29, %s591_s29, %s592_s30  }
   0x9   :  { %s44_s13 = sshll.u32 %s669_s2, 4  ;;  %s594_s14 = smov [#allocation3]   ;;  %s45_s13 = int_to_ptr.hbm [resolvable:$true] %s44_s13 }
   0xa   :  { %s22_s15 = sshll.u32 %s594_s14, 4  ;;  %s595_s3 = smov [#allocation8]   ;;  %s23_s15 = int_to_ptr.vmem [resolvable:$true] %s22_s15 }
   0xb   :  { %25 = dma.hbm_to_vmem [thread:$0]  %s21_s11, 64, %s23_s15, [#allocation4]  }
   0xc   :  { %s46_s16 = sshll.u32 %s595_s3, 4  ;;  %s67_s19 = sshll.u32 %s671_s4, 4  ;;  %s47_s16 = int_to_ptr.vmem [resolvable:$true] %s46_s16  ;;  %s68_s19 = int_to_ptr.hbm [resolvable:$true] %s67_s19 }
   0xd   :  { %49 = dma.hbm_to_vmem [thread:$0]  %s45_s13, 64, %s47_s16, [#allocation7]  }
   0xe   :  { %s596_s0 = smov [#allocation11]  }
   0xf   :  { %s69_s20 = sshll.u32 %s596_s0, 4  ;;  %s70_s20 = int_to_ptr.vmem [resolvable:$true] %s69_s20 }
  0x10   :  { %75 = dma.hbm_to_vmem [thread:$0]  %s68_s19, 256, %s70_s20, [#allocation10], %s591_s29, %s591_s29, %s592_s30  }
  0x11   :  { %582 = dma.done.wait [#allocation4], 64  }
  0x12   :  { %583 = vsyncadd [#allocation4], 4294967232 }
  0x13   :  { %584 = dma.done.wait [#allocation7], 576  }
  0x14   :  { %585 = vsyncadd [#allocation7], 4294966720 }
  0x15   :  { %586 = dma.done.wait [#allocation10], 512  }
  0x16   :  { %587 = vsyncadd [#allocation10], 4294966784  ;;  %v125_v0 = vlaneseq  ;;  %v105_v2 = vld [vmem:[#allocation3] sm:$0xf]  ;;  %vm103_vm0 = vcmask 261120   ;;  %v597_v16 = vmov 0.0  }
  0x17   :  { %v106_v3 = vunpack.c.l.bf16 %v105_v2  ;;  %104 = vst.msk [vmem:[#allocation2] sm:$0xff] %vm103_vm0, %v597_v16  ;;  %v404_v17 = vld [vmem:[#allocation6 + $0x10] sm:$0xff]   ;;  %v388_v18 = vld [vmem:[#allocation6] sm:$0xff]   ;;  %v405_v37 = vld [vmem:[#allocation6 + $0x18] sm:$0xff]   ;;  %vm253_vm1 = vcmask 1041409   ;;  %vm255_vm2 = vcmask 1042434  }
  0x18   :  { %v126_v1 = vshrl.u32 %v125_v0, 7  ;;  %v386_v19 = vld [vmem:[#allocation11 + $0x8] sm:$0xff]  ;;  %v397_v20 = vunpack.c.l.bf16 %v404_v17  ;;  %v398_v21 = vunpack.c.h.bf16 %v404_v17  ;;  %v389_v22 = vunpack.c.l.bf16 %v388_v18  ;;  %v385_v26 = vld [vmem:[#allocation11] sm:$0xff]  ;;  %v384_v36 = vld [vmem:[#allocation9 + $0x8] sm:$0xff]  ;;  %s598_s21 = smov [#allocation12]   ;;  %s353_s25 = sshll.u32 %s673_s6, 4  ;;  %s354_s25 = int_to_ptr.hbm [resolvable:$true] %s353_s25 }
  0x19   :  { %v152_v4 = vperm.slane %v106_v3, 4  ;;  %v159_v5 = vperm.slane %v106_v3, 5  ;;  %v124_v6 = vperm.slane %v106_v3, 0  ;;  %v131_v7 = vperm.slane %v106_v3, 1  ;;  %305 = vmatpush.bf16.msra.mxu0 %v386_v19  ;;  %v279_v35 = vld [vmem:[#allocation8] sm:$0xf]  ;;  %333 = vmatpush.bf16.msra.mxu1 %v384_v36 }
  0x1a   :  { %426 = vset.pattern.permute.xlu1 %v126_v1  ;;  %415 = vset.pattern.permute.xlu0 %v126_v1  ;;  %v166_v10 = vperm.slane %v106_v3, 6  ;;  %v173_v11 = vperm.slane %v106_v3, 7  ;;  %v138_v12 = vperm.slane %v106_v3, 2  ;;  %v145_v13 = vperm.slane %v106_v3, 3  ;;  %v403_v38 = vld [vmem:[#allocation6 + $0x8] sm:$0xff]   ;;  %s351_s22 = sshll.u32 %s598_s21, 4  ;;  %s352_s22 = int_to_ptr.vmem [resolvable:$true] %s351_s22 }
  0x1b   :  { %v427_v8 = vpack.i.bf16 %v159_v5, %v152_v4  ;;  %v416_v9 = vpack.i.bf16 %v131_v7, %v124_v6  ;;  %v390_v23 = vunpack.c.h.bf16 %v388_v18  ;;  %v383_v43 = vld [vmem:[#allocation9] sm:$0xff]  ;;  %v401_v47 = vunpack.c.l.bf16 %v405_v37 }
  0x1c   :  { %v432_v14 = vpack.i.bf16 %v173_v11, %v166_v10  ;;  %v421_v15 = vpack.i.bf16 %v145_v13, %v138_v12  ;;  %v402_v48 = vunpack.c.h.bf16 %v405_v37  ;;  %v393_v49 = vunpack.c.l.bf16 %v403_v38 }
  0x1d   :  { %306 = vmatpush.bf16.msra.mxu0 %v385_v26  ;;  %v394_v50 = vunpack.c.h.bf16 %v403_v38  ;;  %334 = vmatpush.bf16.msra.mxu1 %v383_v43  ;;  %vm257_vm3 = vcmask 1043459   ;;  %vm259_vm4 = vcmask 1044484   ;;  %vm261_vm5 = vcmask 1045509  }
  0x1e   :  { %vm263_vm6 = vcmask 1046534   ;;  %vm265_vm7 = vcmask 1047559  }
  0x20   :  { %373 = vmatmul.msk.bf16.vlgmr.msra.gmra.mxu0 %vm103_vm0, %v279_v35 }
  0x22   :  { %428 = vperm.xlu1 %426, %v427_v8   ;;  %417 = vperm.xlu0 %415, %v416_v9  }
  0x2a   :  { %433 = vperm.xlu1 %426, %v432_v14   ;;  %422 = vperm.xlu0 %415, %v421_v15  }
  0x94   :  { %v429_v24 = vpop.permute.xlu1 %428  ;;  %v418_v25 = vpop.permute.xlu0 %417 }
  0x95   :  { %v431_v27 = vunpack.i.h.bf16 %v429_v24  ;;  %v430_v28 = vunpack.i.l.bf16 %v429_v24  ;;  %v420_v29 = vunpack.i.h.bf16 %v418_v25  ;;  %v419_v30 = vunpack.i.l.bf16 %v418_v25 }
  0x97   :  { %v185_v31 = vmul.f32 %v431_v27, %v398_v21  ;;  %v184_v32 = vmul.f32 %v430_v28, %v397_v20  ;;  %v181_v33 = vmul.f32 %v420_v29, %v390_v23  ;;  %v180_v34 = vmul.f32 %v419_v30, %v389_v22 }
  0x99   :  { %v224_v39 = vsel %vm103_vm0, %v185_v31, 0.0  ;;  %v217_v40 = vsel %vm103_vm0, %v184_v32, 0.0  ;;  %v196_v41 = vsel %vm103_vm0, %v181_v33, 0.0  ;;  %v189_v42 = vsel %vm103_vm0, %v180_v34, 0.0 }
  0x9a   :  { %v218_v44 = vrot.slane %v217_v40, 4  ;;  %v197_v45 = vrot.slane %v196_v41, 4  ;;  %v190_v46 = vrot.slane %v189_v42, 4  ;;  %v225_v51 = vrot.slane %v224_v39, 4 }
  0x9c   :  { %v198_v52 = vadd.f32 %v197_v45, %v196_v41  ;;  %v191_v53 = vadd.f32 %v190_v46, %v189_v42  ;;  %v434_v54 = vpop.permute.xlu1 %433  ;;  %v423_v55 = vpop.permute.xlu0 %422  ;;  %v219_v60 = vadd.f32 %v218_v44, %v217_v40  ;;  %v226_v3 = vadd.f32 %v225_v51, %v224_v39 }
  0x9d   :  { %v436_v56 = vunpack.i.h.bf16 %v434_v54  ;;  %v435_v57 = vunpack.i.l.bf16 %v434_v54  ;;  %v425_v58 = vunpack.i.h.bf16 %v423_v55  ;;  %v424_v59 = vunpack.i.l.bf16 %v423_v55 }
  0x9e   :  { %v199_v61 = vrot.slane %v198_v52, 2  ;;  %v192_v62 = vrot.slane %v191_v53, 2  ;;  %v220_v8 = vrot.slane %v219_v60, 2  ;;  %v227_v15 = vrot.slane %v226_v3, 2 }
  0x9f   :  { %v187_v63 = vmul.f32 %v436_v56, %v402_v48  ;;  %v186_v0 = vmul.f32 %v435_v57, %v401_v47  ;;  %v183_v1 = vmul.f32 %v425_v58, %v394_v50  ;;  %v182_v2 = vmul.f32 %v424_v59, %v393_v49  ;;  %v123_v50 = vld [vmem:[#allocation2] sm:$0xff]  ;;  %v308_v57 = vpop.f32.mrf.mxu0 }
  0xa0   :  { %v200_v9 = vadd.f32 %v199_v61, %v198_v52  ;;  %v193_v10 = vadd.f32 %v192_v62, %v191_v53  ;;  %v221_v20 = vadd.f32 %v220_v8, %v219_v60  ;;  %v228_v27 = vadd.f32 %v227_v15, %v226_v3  ;;  %v437_v59 = vld [vmem:[%s672_s5] ss:$0 sm:$0xff] }
  0xa1   :  { %v238_v4 = vsel %vm103_vm0, %v187_v63, 0.0  ;;  %v231_v5 = vsel %vm103_vm0, %v186_v0, 0.0  ;;  %v210_v6 = vsel %vm103_vm0, %v183_v1, 0.0  ;;  %v203_v7 = vsel %vm103_vm0, %v182_v2, 0.0 }
  0xa2   :  { %v239_v11 = vrot.slane %v238_v4, 4  ;;  %v232_v12 = vrot.slane %v231_v5, 4  ;;  %v211_v13 = vrot.slane %v210_v6, 4  ;;  %v204_v14 = vrot.slane %v203_v7, 4 }
  0xa3   :  { %v201_v21 = vrot.slane %v200_v9, 1  ;;  %v194_v22 = vrot.slane %v193_v10, 1  ;;  %v222_v34 = vrot.slane %v221_v20, 1  ;;  %v229_v37 = vrot.slane %v228_v27, 1 }
  0xa4   :  { %v240_v16 = vadd.f32 %v239_v11, %v238_v4  ;;  %v233_v17 = vadd.f32 %v232_v12, %v231_v5  ;;  %v212_v18 = vadd.f32 %v211_v13, %v210_v6  ;;  %v205_v19 = vadd.f32 %v204_v14, %v203_v7 }
  0xa5   :  { %v202_v31 = vadd.f32 %v201_v21, %v200_v9  ;;  %v195_v32 = vadd.f32 %v194_v22, %v193_v10  ;;  %v223_v43 = vadd.f32 %v222_v34, %v221_v20  ;;  %v230_v45 = vadd.f32 %v229_v37, %v228_v27 }
  0xa6   :  { %v241_v23 = vrot.slane %v240_v16, 2  ;;  %v234_v24 = vrot.slane %v233_v17, 2  ;;  %v213_v25 = vrot.slane %v212_v18, 2  ;;  %v206_v26 = vrot.slane %v205_v19, 2 }
  0xa7   :  { %v254_v41 = vsel %vm253_vm1, %v202_v31, %v195_v32  ;;  %v310_v58 = vpop.f32.mrf.mxu0 }
  0xa8   :  { %v235_v28 = vadd.f32 %v234_v24, %v233_v17  ;;  %v214_v29 = vadd.f32 %v213_v25, %v212_v18  ;;  %v207_v30 = vadd.f32 %v206_v26, %v205_v19  ;;  %v242_v33 = vadd.f32 %v241_v23, %v240_v16 }
  0xaa   :  { %v215_v35 = vrot.slane %v214_v29, 1  ;;  %v208_v36 = vrot.slane %v207_v30, 1  ;;  %v236_v38 = vrot.slane %v235_v28, 1  ;;  %v243_v42 = vrot.slane %v242_v33, 1 }
  0xac   :  { %v216_v39 = vadd.f32 %v215_v35, %v214_v29  ;;  %v209_v40 = vadd.f32 %v208_v36, %v207_v30  ;;  %v237_v47 = vadd.f32 %v236_v38, %v235_v28  ;;  %v244_v49 = vadd.f32 %v243_v42, %v242_v33 }
  0xae   :  { %v256_v44 = vsel %vm255_vm2, %v209_v40, %v254_v41 }
  0xaf   :  { %v258_v46 = vsel %vm257_vm3, %v216_v39, %v256_v44 }
  0xb0   :  { %v260_v48 = vsel %vm259_vm4, %v223_v43, %v258_v46 }
  0xb1   :  { %v262_v51 = vsel %vm261_vm5, %v230_v45, %v260_v48 }
  0xb2   :  { %v264_v52 = vsel %vm263_vm6, %v237_v47, %v262_v51 }
  0xb3   :  { %v266_v53 = vsel %vm265_vm7, %v244_v49, %v264_v52 }
  0xb4   :  { %v268_v54 = vadd.f32 %v266_v53, %v123_v50 }
  0xb6   :  { %269 = vst.msk [vmem:[#allocation2] sm:$0xff] %vm103_vm0, %v268_v54 }
  0xbd   :  { %v273_v55 = vld [vmem:[#allocation2] sm:$0xff] }
  0xbe   :  { %v274_v56 = vpack.c.bf16 %v273_v55, %v273_v55 }
  0xc0   :  { %382 = vmatmul.msk.bf16.vlgmr.msra.gmra.mxu1 %vm103_vm0, %v274_v56 }
 0x13d   :  { %v336_v60 = vpop.f32.mrf.mxu1 }
 0x13e   :  { %v337_v61 = vadd.f32 %v336_v60, %v308_v57 }
 0x140   :  { %v344_v62 = vadd.f32 %v437_v59, %v337_v61 }
 0x142   :  { %345 = vst [vmem:[#allocation12] sm:$0xff] %v344_v62 }
 0x143   :  { %356 = dma.vmem_to_hbm [thread:$0]  %s352_s22, 128, %s354_s25, [#allocation5]  }
 0x145   :  { %v338_v63 = vpop.f32.mrf.mxu1 }
 0x146   :  { %588 = dma.done.wait [#allocation5], 128  }
 0x147   :  { %589 = vsyncadd [#allocation5], 4294967168 }
 0x148   :  { %361 = vsyncpa [#allocation4], 1 }
 0x149   :  { %362 = vsyncpa [#allocation7], 1 }
 0x14a   :  { %363 = vsyncpa [#allocation10], 1 }
 0x14b   :  { %364 = vsyncpa [#allocation5], 1 }

</bundles_post_ra>
